<compile_context>
chip_gen: v7x
topology: tpu7x:2x2x1
jax: 0.10.0
libtpu: 0.0.40
codegen_flags: <defaults>
</compile_context>

<pallas_src>
import jax
import jax.numpy as jnp
from jax.experimental import pallas as pl
from jax.experimental.pallas import tpu as pltpu

# Layer widths from the PyTorch module: 5 -> 50 x6 -> 4
LAYER_DIMS = [5, 50, 50, 50, 50, 50, 50, 4]
IN_DIM = LAYER_DIMS[0]
OUT_DIM = LAYER_DIMS[-1]
NUM_LAYERS = len(LAYER_DIMS) - 1  # 7 Linear layers
PAD = 64  # packed layer width (>= max(LAYER_DIMS), multiple of 8)


def mlp_kernel(x_ref, w_ref, b_ref, o_ref):
    """x_ref: (tile, PAD) f32, columns >= IN_DIM are zero.
    w_ref: (7, PAD, PAD) bf16, (in, out)-oriented, zero padded.
    b_ref: (7, 1, PAD) f32, zero padded.
    o_ref: (tile, OUT_DIM) f32.

    h = tanh(h @ W_t + b) for the first 6 layers, final layer linear.
    The tiny weight is the MXU-resident RHS; tile rows of activations stream
    as LHS.  bf16 MXU inputs, f32 accumulation; bias add & tanh in f32.
    """
    h = x_ref[...].astype(jnp.float32)                 # (tile, PAD)
    for layer in range(NUM_LAYERS):
        w = w_ref[layer]                               # (PAD, PAD) bf16, weight-stationary
        b = b_ref[layer]                               # (1, PAD) f32, broadcasts over rows
        h = jnp.dot(h.astype(w.dtype), w,
                    preferred_element_type=jnp.float32) + b
        if layer < NUM_LAYERS - 1:
            h = jnp.tanh(h)                            # EUP
    o_ref[...] = h[:, :OUT_DIM].astype(o_ref.dtype)


def _choose_tile(n, tile_n):
    """Row-tile size: lane/sublane aligned, capped at tile_n, and aiming for
    at least 2 grid steps so the 'parallel' axis shards across both
    TensorCores on v7x (harmless on single-TC v5e/v6e)."""
    tile_n = max(256, (tile_n // 256) * 256)
    two_step = ((pl.cdiv(n, 2) + 255) // 256) * 256
    tile = min(tile_n, two_step)
    if tile >= n:
        tile = n  # single full-extent block for small problems
    return tile


def mlp_forward(x, packed_w, packed_b, *, tile_n=8192):
    """x: (a, b, 5) float32.  packed_w: (7, 64, 64) bf16.  packed_b: (7, 1, 64) f32."""
    a, b, c = x.shape
    assert c == IN_DIM
    n = a * b

    # Cheap, lane-friendly wrapper plumbing: reshape + zero-pad minor dim.
    x2 = jnp.pad(x.reshape(n, c), ((0, 0), (0, PAD - IN_DIM)))

    tile = _choose_tile(n, tile_n)
    grid = (pl.cdiv(n, tile),)

    in_specs = [
        pl.BlockSpec((tile, PAD), lambda i: (i, 0)),
        # Grid-invariant packed params: same block every step -> stay resident.
        pl.BlockSpec(packed_w.shape, lambda i: (0, 0, 0)),
        pl.BlockSpec(packed_b.shape, lambda i: (0, 0, 0)),
    ]
    out_specs = pl.BlockSpec((tile, OUT_DIM), lambda i: (i, 0))

    # Advisory cost hint so XLA schedules the surrounding ops around us.
    flops_per_row = 2 * sum(LAYER_DIMS[i] * LAYER_DIMS[i + 1]
                            for i in range(NUM_LAYERS))
    transc_per_row = sum(LAYER_DIMS[1:-1])  # 6 * 50 tanh per row
    param_bytes = int(packed_w.size) * packed_w.dtype.itemsize \
        + int(packed_b.size) * packed_b.dtype.itemsize
    cost = pl.CostEstimate(
        flops=flops_per_row * n,
        transcendentals=transc_per_row * n,
        bytes_accessed=(PAD + OUT_DIM) * 4 * n + param_bytes,
    )

    out2 = pl.pallas_call(
        mlp_kernel,
        out_shape=jax.ShapeDtypeStruct((n, OUT_DIM), x.dtype),
        grid_spec=pltpu.PrefetchScalarGridSpec(
            num_scalar_prefetch=0,
            grid=grid,
            in_specs=in_specs,
            out_specs=out_specs,
        ),
        compiler_params=pltpu.CompilerParams(
            dimension_semantics=("parallel",),
            vmem_limit_bytes=64 * 1024 * 1024,
        ),
        cost_estimate=cost,
    )(x2, packed_w, packed_b)

    return out2.reshape(a, b, OUT_DIM)


def init_params(key):
    """Deterministic init mimicking PyTorch nn.Linear default:
    U(-1/sqrt(fan_in), 1/sqrt(fan_in)) for weight and bias; weights kept in
    PyTorch's (out, in) orientation."""
    params = []
    for i in range(NUM_LAYERS):
        fan_in, fan_out = LAYER_DIMS[i], LAYER_DIMS[i + 1]
        key, kw, kb = jax.random.split(key, 3)
        bound = 1.0 / (fan_in ** 0.5)
        w = jax.random.uniform(kw, (fan_out, fan_in), jnp.float32,
                               minval=-bound, maxval=bound)
        b = jax.random.uniform(kb, (fan_out,), jnp.float32,
                               minval=-bound, maxval=bound)
        params.append((w, b))
    return params


def pack_params(params, *, weight_dtype=jnp.bfloat16):
    """Pack per-layer (W:(out,in), b:(out,)) into zero-padded
    W_packed:(7,64,64) [(in,out)-oriented] and B_packed:(7,1,64)."""
    wp = jnp.zeros((NUM_LAYERS, PAD, PAD), jnp.float32)
    bp = jnp.zeros((NUM_LAYERS, 1, PAD), jnp.float32)
    for l, (w, b) in enumerate(params):
        fan_out, fan_in = w.shape
        wp = wp.at[l, :fan_in, :fan_out].set(w.T)
        bp = bp.at[l, 0, :fan_out].set(b)
    return wp.astype(weight_dtype), bp


def mlp_reference(x, params, *, matmul_dtype=jnp.bfloat16):
    """Plain JAX reference of the PyTorch forward.  matmul_dtype=bfloat16
    reproduces the kernel's bf16-in / f32-accumulate numerics; float32 gives
    the exact PyTorch-spec math."""
    a, b, c = x.shape
    h = x.reshape(-1, c).astype(jnp.float32)
    for i, (w, bia) in enumerate(params):
        h = jnp.dot(h.astype(matmul_dtype), w.T.astype(matmul_dtype),
                    preferred_element_type=jnp.float32) + bia.reshape(1, -1)
        if i < NUM_LAYERS - 1:
            h = jnp.tanh(h)
    return h.reshape(a, b, -1)


if __name__ == "__main__":
    key = jax.random.PRNGKey(0)
    params = init_params(key)
    packed_w, packed_b = pack_params(params)

    # Small case consistent with the module's (a, b, 5) input convention.
    a, b = 2, 8
    x = jax.random.normal(jax.random.PRNGKey(0), (a, b, IN_DIM), jnp.float32)
    out = jax.block_until_ready(mlp_forward(x, packed_w, packed_b))
    ref_bf16 = mlp_reference(x, params, matmul_dtype=jnp.bfloat16)
    ref_f32 = mlp_reference(x, params, matmul_dtype=jnp.float32)
    assert out.shape == (a, b, OUT_DIM), out.shape
    assert jnp.allclose(out, ref_bf16, atol=5e-3, rtol=5e-3), "mismatch vs bf16-matched reference"
    assert jnp.allclose(out, ref_f32, atol=5e-2, rtol=5e-2), "mismatch vs f32 reference"

    # Multi-tile case: >=2 grid steps (v7x megacore path) and a masked tail tile.
    a2, b2 = 40, 130  # n = 5200 -> 3 tiles at tile_n=2048, partial tail
    x2 = jax.random.normal(jax.random.PRNGKey(1), (a2, b2, IN_DIM), jnp.float32)
    out2 = jax.block_until_ready(mlp_forward(x2, packed_w, packed_b, tile_n=2048))
    ref2 = mlp_reference(x2, params, matmul_dtype=jnp.bfloat16)
    assert out2.shape == (a2, b2, OUT_DIM), out2.shape
    assert jnp.isfinite(out2).all(), "NaN/Inf leaked from the masked tail tile"
    assert jnp.allclose(out2, ref2, atol=5e-3, rtol=5e-3), "mismatch (tiled)"

    print("KERNEL_OK")
</pallas_src>

<mosaic_0001>
module attributes {stable_mosaic.version = 11 : i64} {
  func.func @mlp_kernel(%arg0: i32, %arg1: memref<16x64xf32, #tpu.memory_space<vmem>>, %arg2: memref<7x64x64xbf16, #tpu.memory_space<vmem>>, %arg3: memref<7x1x64xf32, #tpu.memory_space<vmem>>, %arg4: memref<16x4xf32, #tpu.memory_space<vmem>>) attributes {dimension_semantics = [#tpu.dimension_semantics<parallel>], iteration_bounds = array<i64: 1>, scalar_prefetch = 0 : i64, scratch_operands = 0 : i64, tpu.core_type = #tpu.core_type<tc>, window_params = [{transform_indices = @transform_0, window_bounds = array<i64: 16, 64>}, {pipeline_mode = #tpu.pipeline_mode<synchronous>, transform_indices = @transform_1, window_bounds = array<i64: 7, 64, 64>}, {pipeline_mode = #tpu.pipeline_mode<synchronous>, transform_indices = @transform_2, window_bounds = array<i64: 7, 1, 64>}, {transform_indices = @transform_3, window_bounds = array<i64: 16, 4>}]} {
    %c0 = arith.constant 0 : index
    %c0_0 = arith.constant 0 : index
    %0 = vector.load %arg1[%c0, %c0_0] : memref<16x64xf32, #tpu.memory_space<vmem>>, vector<16x64xf32>
    %c0_1 = arith.constant 0 : index
    %c0_2 = arith.constant 0 : index
    %c0_3 = arith.constant 0 : index
    %1 = vector.load %arg2[%c0_1, %c0_2, %c0_3] : memref<7x64x64xbf16, #tpu.memory_space<vmem>>, vector<1x64x64xbf16>
    %2 = vector.shape_cast %1 : vector<1x64x64xbf16> to vector<64x64xbf16>
    %c0_4 = arith.constant 0 : index
    %c0_5 = arith.constant 0 : index
    %c0_6 = arith.constant 0 : index
    %3 = vector.load %arg3[%c0_4, %c0_5, %c0_6] : memref<7x1x64xf32, #tpu.memory_space<vmem>>, vector<1x1x64xf32>
    %4 = vector.shape_cast %3 : vector<1x1x64xf32> to vector<1x64xf32>
    %5 = arith.truncf %0 : vector<16x64xf32> to vector<16x64xbf16>
    %cst = arith.constant dense<0.000000e+00> : vector<16x64xf32>
    %6 = tpu.matmul %5, %2, %cst {dimension_numbers = #tpu.dot_dimension_numbers<[1], [0], [0], [1], [0, 0, 1, 1], [], []>} : vector<16x64xbf16>, vector<64x64xbf16>, vector<16x64xf32> -> vector<16x64xf32>
    %7 = vector.broadcast %4 : vector<1x64xf32> to vector<16x64xf32>
    %8 = arith.addf %6, %7 : vector<16x64xf32>
    %9 = math.tanh %8 : vector<16x64xf32>
    %c1 = arith.constant 1 : index
    %c0_7 = arith.constant 0 : index
    %c0_8 = arith.constant 0 : index
    %10 = vector.load %arg2[%c1, %c0_7, %c0_8] : memref<7x64x64xbf16, #tpu.memory_space<vmem>>, vector<1x64x64xbf16>
    %11 = vector.shape_cast %10 : vector<1x64x64xbf16> to vector<64x64xbf16>
    %c1_9 = arith.constant 1 : index
    %c0_10 = arith.constant 0 : index
    %c0_11 = arith.constant 0 : index
    %12 = vector.load %arg3[%c1_9, %c0_10, %c0_11] : memref<7x1x64xf32, #tpu.memory_space<vmem>>, vector<1x1x64xf32>
    %13 = vector.shape_cast %12 : vector<1x1x64xf32> to vector<1x64xf32>
    %14 = arith.truncf %9 : vector<16x64xf32> to vector<16x64xbf16>
    %cst_12 = arith.constant dense<0.000000e+00> : vector<16x64xf32>
    %15 = tpu.matmul %14, %11, %cst_12 {dimension_numbers = #tpu.dot_dimension_numbers<[1], [0], [0], [1], [0, 0, 1, 1], [], []>} : vector<16x64xbf16>, vector<64x64xbf16>, vector<16x64xf32> -> vector<16x64xf32>
    %16 = vector.broadcast %13 : vector<1x64xf32> to vector<16x64xf32>
    %17 = arith.addf %15, %16 : vector<16x64xf32>
    %18 = math.tanh %17 : vector<16x64xf32>
    %c2 = arith.constant 2 : index
    %c0_13 = arith.constant 0 : index
    %c0_14 = arith.constant 0 : index
    %19 = vector.load %arg2[%c2, %c0_13, %c0_14] : memref<7x64x64xbf16, #tpu.memory_space<vmem>>, vector<1x64x64xbf16>
    %20 = vector.shape_cast %19 : vector<1x64x64xbf16> to vector<64x64xbf16>
    %c2_15 = arith.constant 2 : index
    %c0_16 = arith.constant 0 : index
    %c0_17 = arith.constant 0 : index
    %21 = vector.load %arg3[%c2_15, %c0_16, %c0_17] : memref<7x1x64xf32, #tpu.memory_space<vmem>>, vector<1x1x64xf32>
    %22 = vector.shape_cast %21 : vector<1x1x64xf32> to vector<1x64xf32>
    %23 = arith.truncf %18 : vector<16x64xf32> to vector<16x64xbf16>
    %cst_18 = arith.constant dense<0.000000e+00> : vector<16x64xf32>
    %24 = tpu.matmul %23, %20, %cst_18 {dimension_numbers = #tpu.dot_dimension_numbers<[1], [0], [0], [1], [0, 0, 1, 1], [], []>} : vector<16x64xbf16>, vector<64x64xbf16>, vector<16x64xf32> -> vector<16x64xf32>
    %25 = vector.broadcast %22 : vector<1x64xf32> to vector<16x64xf32>
    %26 = arith.addf %24, %25 : vector<16x64xf32>
    %27 = math.tanh %26 : vector<16x64xf32>
    %c3 = arith.constant 3 : index
    %c0_19 = arith.constant 0 : index
    %c0_20 = arith.constant 0 : index
    %28 = vector.load %arg2[%c3, %c0_19, %c0_20] : memref<7x64x64xbf16, #tpu.memory_space<vmem>>, vector<1x64x64xbf16>
    %29 = vector.shape_cast %28 : vector<1x64x64xbf16> to vector<64x64xbf16>
    %c3_21 = arith.constant 3 : index
    %c0_22 = arith.constant 0 : index
    %c0_23 = arith.constant 0 : index
    %30 = vector.load %arg3[%c3_21, %c0_22, %c0_23] : memref<7x1x64xf32, #tpu.memory_space<vmem>>, vector<1x1x64xf32>
    %31 = vector.shape_cast %30 : vector<1x1x64xf32> to vector<1x64xf32>
    %32 = arith.truncf %27 : vector<16x64xf32> to vector<16x64xbf16>
    %cst_24 = arith.constant dense<0.000000e+00> : vector<16x64xf32>
    %33 = tpu.matmul %32, %29, %cst_24 {dimension_numbers = #tpu.dot_dimension_numbers<[1], [0], [0], [1], [0, 0, 1, 1], [], []>} : vector<16x64xbf16>, vector<64x64xbf16>, vector<16x64xf32> -> vector<16x64xf32>
    %34 = vector.broadcast %31 : vector<1x64xf32> to vector<16x64xf32>
    %35 = arith.addf %33, %34 : vector<16x64xf32>
    %36 = math.tanh %35 : vector<16x64xf32>
    %c4 = arith.constant 4 : index
    %c0_25 = arith.constant 0 : index
    %c0_26 = arith.constant 0 : index
    %37 = vector.load %arg2[%c4, %c0_25, %c0_26] : memref<7x64x64xbf16, #tpu.memory_space<vmem>>, vector<1x64x64xbf16>
    %38 = vector.shape_cast %37 : vector<1x64x64xbf16> to vector<64x64xbf16>
    %c4_27 = arith.constant 4 : index
    %c0_28 = arith.constant 0 : index
    %c0_29 = arith.constant 0 : index
    %39 = vector.load %arg3[%c4_27, %c0_28, %c0_29] : memref<7x1x64xf32, #tpu.memory_space<vmem>>, vector<1x1x64xf32>
    %40 = vector.shape_cast %39 : vector<1x1x64xf32> to vector<1x64xf32>
    %41 = arith.truncf %36 : vector<16x64xf32> to vector<16x64xbf16>
    %cst_30 = arith.constant dense<0.000000e+00> : vector<16x64xf32>
    %42 = tpu.matmul %41, %38, %cst_30 {dimension_numbers = #tpu.dot_dimension_numbers<[1], [0], [0], [1], [0, 0, 1, 1], [], []>} : vector<16x64xbf16>, vector<64x64xbf16>, vector<16x64xf32> -> vector<16x64xf32>
    %43 = vector.broadcast %40 : vector<1x64xf32> to vector<16x64xf32>
    %44 = arith.addf %42, %43 : vector<16x64xf32>
    %45 = math.tanh %44 : vector<16x64xf32>
    %c5 = arith.constant 5 : index
    %c0_31 = arith.constant 0 : index
    %c0_32 = arith.constant 0 : index
    %46 = vector.load %arg2[%c5, %c0_31, %c0_32] : memref<7x64x64xbf16, #tpu.memory_space<vmem>>, vector<1x64x64xbf16>
    %47 = vector.shape_cast %46 : vector<1x64x64xbf16> to vector<64x64xbf16>
    %c5_33 = arith.constant 5 : index
    %c0_34 = arith.constant 0 : index
    %c0_35 = arith.constant 0 : index
    %48 = vector.load %arg3[%c5_33, %c0_34, %c0_35] : memref<7x1x64xf32, #tpu.memory_space<vmem>>, vector<1x1x64xf32>
    %49 = vector.shape_cast %48 : vector<1x1x64xf32> to vector<1x64xf32>
    %50 = arith.truncf %45 : vector<16x64xf32> to vector<16x64xbf16>
    %cst_36 = arith.constant dense<0.000000e+00> : vector<16x64xf32>
    %51 = tpu.matmul %50, %47, %cst_36 {dimension_numbers = #tpu.dot_dimension_numbers<[1], [0], [0], [1], [0, 0, 1, 1], [], []>} : vector<16x64xbf16>, vector<64x64xbf16>, vector<16x64xf32> -> vector<16x64xf32>
    %52 = vector.broadcast %49 : vector<1x64xf32> to vector<16x64xf32>
    %53 = arith.addf %51, %52 : vector<16x64xf32>
    %54 = math.tanh %53 : vector<16x64xf32>
    %c6 = arith.constant 6 : index
    %c0_37 = arith.constant 0 : index
    %c0_38 = arith.constant 0 : index
    %55 = vector.load %arg2[%c6, %c0_37, %c0_38] : memref<7x64x64xbf16, #tpu.memory_space<vmem>>, vector<1x64x64xbf16>
    %56 = vector.shape_cast %55 : vector<1x64x64xbf16> to vector<64x64xbf16>
    %c6_39 = arith.constant 6 : index
    %c0_40 = arith.constant 0 : index
    %c0_41 = arith.constant 0 : index
    %57 = vector.load %arg3[%c6_39, %c0_40, %c0_41] : memref<7x1x64xf32, #tpu.memory_space<vmem>>, vector<1x1x64xf32>
    %58 = vector.shape_cast %57 : vector<1x1x64xf32> to vector<1x64xf32>
    %59 = arith.truncf %54 : vector<16x64xf32> to vector<16x64xbf16>
    %cst_42 = arith.constant dense<0.000000e+00> : vector<16x64xf32>
    %60 = tpu.matmul %59, %56, %cst_42 {dimension_numbers = #tpu.dot_dimension_numbers<[1], [0], [0], [1], [0, 0, 1, 1], [], []>} : vector<16x64xbf16>, vector<64x64xbf16>, vector<16x64xf32> -> vector<16x64xf32>
    %61 = vector.broadcast %58 : vector<1x64xf32> to vector<16x64xf32>
    %62 = arith.addf %60, %61 : vector<16x64xf32>
    %63 = vector.extract_strided_slice %62 {offsets = [0, 0], sizes = [16, 4], strides = [1, 1]} : vector<16x64xf32> to vector<16x4xf32>
    %c0_43 = arith.constant 0 : index
    %c0_44 = arith.constant 0 : index
    %64 = vector.load %arg4[%c0_43, %c0_44] : memref<16x4xf32, #tpu.memory_space<vmem>>, vector<16x4xf32>
    tpu.vector_store %arg4[%c0_43, %c0_44], %63 {strides = array<i32>} : memref<16x4xf32, #tpu.memory_space<vmem>>, vector<16x4xf32>,
    return
  }
  func.func @transform_0(%arg0: i32) -> (i32, i32) {
    %c0_i32 = arith.constant 0 : i32
    %c0_i32_0 = arith.constant 0 : i32
    return %arg0, %c0_i32 : i32, i32
  }
  func.func @transform_1(%arg0: i32) -> (i32, i32, i32) {
    %c0_i32 = arith.constant 0 : i32
    %c0_i32_0 = arith.constant 0 : i32
    %c0_i32_1 = arith.constant 0 : i32
    %c0_i32_2 = arith.constant 0 : i32
    return %c0_i32, %c0_i32_0, %c0_i32_1 : i32, i32, i32
  }
  func.func @transform_2(%arg0: i32) -> (i32, i32, i32) {
    %c0_i32 = arith.constant 0 : i32
    %c0_i32_0 = arith.constant 0 : i32
    %c0_i32_1 = arith.constant 0 : i32
    %c0_i32_2 = arith.constant 0 : i32
    return %c0_i32, %c0_i32_0, %c0_i32_1 : i32, i32, i32
  }
  func.func @transform_3(%arg0: i32) -> (i32, i32) {
    %c0_i32 = arith.constant 0 : i32
    %c0_i32_0 = arith.constant 0 : i32
    return %arg0, %c0_i32 : i32, i32
  }
}

</mosaic_0001>

<bundles_post_ra>
// kernel: tpu_custom_call.1
= control target key start
LH: loop header
LB: loop body
LE: loop exit
PB: predicated region body
PF: predicated region fallthrough
CT: control target
= control target key end

     0   :  { %8 = vsyncpa [#allocation3], 0  ;;  %s1147_s0 = inlined_call_operand.hbm [shape: f32[16,64], index: 0, kind: input, shape index: {}]   ;;  %s1148_s1 = inlined_call_operand.hbm [shape: bf16[7,64,64], index: 1, kind: input, shape index: {}]   ;;  %s1149_s2 = inlined_call_operand.hbm [shape: f32[7,1,64], index: 2, kind: input, shape index: {}]   ;;  %s1150_s3 = inlined_call_operand.hbm [shape: f32[16,4], index: 3, kind: output, shape index: {}]  }
   0x1   :  { %9 = vsyncpa [#allocation6], 0 }
   0x2   :  { %10 = vsyncpa [#allocation4], 0  ;;  %s1012_s12 = smov [#allocation5]   ;;  %s918_s16 = scalar_lea.hbm %s1148_s1, 3584 }
   0x3   :  { %s28_s13 = sshll.u32 %s1012_s12, 4  ;;  %p919_p0 = scmp.ne.s32.totalorder %s1148_s1, %s918_s16  ;;  %s29_s13 = int_to_ptr.vmem [resolvable:$true] %s28_s13 }
   0x4   :  { %p922_p1 = scmp.lt.u32.totalorder %s918_s16, %s1148_s1 }
   0x6   :  { %p924_p2 = pnand %p922_p1, %p919_p0 }
   0x8   :  { %927 = shalt.err (!%p924_p2)
}
   0x9   :  { %s928_s21 = scalar_lea.vmem %s29_s13, 3584  ;;  %p933_p4 = scmp.lt.s32.totalorder %s29_s13, %s29_s13 }
   0xa   :  { %p929_p3 = scmp.ne.s32.totalorder %s29_s13, %s928_s21  ;;  %p934_p5 = scmp.lt.s32.totalorder %s928_s21, %s928_s21 }
   0xc   :  { %p935_p6 = por %p934_p5, %p933_p4 }
   0xe   :  { %p936_p7 = pnand %p935_p6, %p929_p3 }
  0x10   :  { %939 = shalt.err (!%p936_p7)
}
  0x11   :  { %s1013_s22 = smov 64   ;;  %s1014_s23 = smov 4  }
  0x12   :  { %34 = dma.hbm_to_vmem [thread:$0]  %s1148_s1, 3584, %s29_s13, [#allocation6], %s1013_s22, %s1013_s22, %s1014_s23  }
  0x13   :  { %s1015_s26 = smov [#allocation2]   ;;  %s940_s30 = scalar_lea.hbm %s1147_s0, 256 }
  0x14   :  { %s16_s27 = sshll.u32 %s1015_s26, 4  ;;  %p941_p8 = scmp.ne.s32.totalorder %s1147_s0, %s940_s30  ;;  %s17_s27 = int_to_ptr.vmem [resolvable:$true] %s16_s27 }
  0x15   :  { %p944_p9 = scmp.lt.u32.totalorder %s940_s30, %s1147_s0 }
  0x17   :  { %p946_p10 = pnand %p944_p9, %p941_p8 }
  0x19   :  { %949 = shalt.err (!%p946_p10)
}
  0x1a   :  { %s950_s8 = scalar_lea.vmem %s17_s27, 256  ;;  %p955_p12 = scmp.lt.s32.totalorder %s17_s27, %s17_s27 }
  0x1b   :  { %p951_p11 = scmp.ne.s32.totalorder %s17_s27, %s950_s8  ;;  %p956_p13 = scmp.lt.s32.totalorder %s950_s8, %s950_s8 }
  0x1d   :  { %p957_p0 = por %p956_p13, %p955_p12 }
  0x1f   :  { %p958_p1 = pnand %p957_p0, %p951_p11 }
  0x21   :  { %961 = shalt.err (!%p958_p1)
}
  0x22   :  { %s1016_s1 = smov 128   ;;  %s1017_s9 = smov 8  }
  0x23   :  { %22 = dma.hbm_to_vmem [thread:$0]  %s1147_s0, 256, %s17_s27, [#allocation3], %s1016_s1, %s1016_s1, %s1017_s9  }
  0x24   :  { %s1018_s12 = smov [#allocation7]   ;;  %s962_s16 = scalar_lea.hbm %s1149_s2, 112 }
  0x25   :  { %s40_s13 = sshll.u32 %s1018_s12, 4  ;;  %p963_p2 = scmp.ne.s32.totalorder %s1149_s2, %s962_s16  ;;  %s41_s13 = int_to_ptr.vmem [resolvable:$true] %s40_s13 }
  0x26   :  { %p966_p3 = scmp.lt.u32.totalorder %s962_s16, %s1149_s2 }
  0x28   :  { %p968_p4 = pnand %p966_p3, %p963_p2 }
  0x2a   :  { %971 = shalt.err (!%p968_p4)
}
  0x2b   :  { %s972_s21 = scalar_lea.vmem %s41_s13, 112  ;;  %s976_s0 = scalar_lea.vmem %s41_s13, 128 }
  0x2c   :  { %p973_p5 = scmp.ne.s32.totalorder %s41_s13, %s972_s21  ;;  %p977_p6 = scmp.lt.s32.totalorder %s41_s13, %s41_s13 }
  0x2d   :  { %p978_p7 = scmp.lt.s32.totalorder %s976_s0, %s972_s21 }
  0x2f   :  { %p979_p8 = por %p978_p7, %p977_p6 }
  0x31   :  { %p980_p9 = pnand %p979_p8, %p973_p5 }
  0x33   :  { %983 = shalt.err (!%p980_p9)
}
  0x34   :  { %s1019_s22 = smov 16   ;;  %s1020_s23 = smov 1  }
  0x35   :  { %46 = dma.hbm_to_vmem [thread:$0]  %s1149_s2, 112, %s41_s13, [#allocation6], %s1019_s22, %s1019_s22, %s1020_s23  }
  0x36   :  { %1006 = dma.done.wait [#allocation3], 256  }
  0x37   :  { %1007 = vsyncadd [#allocation3], 4294967040 }
  0x38   :  { %1008 = dma.done.wait [#allocation6], 3696  }
  0x39   :  { %1009 = vsyncadd [#allocation6], 4294963600  ;;  %v1021_v0 = vmov 0.0   ;;  %vm1022_vm0 = vmmov 0   ;;  %v866_v1 = vld [vmem:[#allocation5] sm:$0xff]   ;;  %v867_v2 = vld [vmem:[#allocation5 + $0x8] sm:$0xff]  }
  0x3a   :  { %770 = vmatprep.subr.bf16.mxu0 %v1021_v0  ;;  %778 = vmatprep.mubr.msk.bf16.mxu0 %vm1022_vm0, %v1021_v0  ;;  %v868_v3 = vld [vmem:[#allocation5 + $0x10] sm:$0xff]   ;;  %vm99_vm1 = vcmask 523264   ;;  %v869_v4 = vld [vmem:[#allocation5 + $0x18] sm:$0xff]   ;;  %v870_v8 = vld [vmem:[#allocation5 + $0x20] sm:$0xff]   ;;  %vm672_vm2 = vcmask 31744   ;;  %s1023_s2 = smov [#allocation8]  }
  0x3b   :  { %782 = vmatprep.subr.bf16.mxu1 %v1021_v0  ;;  %790 = vmatprep.mubr.msk.bf16.mxu1 %vm1022_vm0, %v1021_v0  ;;  %v57_v5 = vld [vmem:[#allocation2] sm:$0xff]  ;;  %v58_v6 = vld [vmem:[#allocation2 + $0x8] sm:$0xff]  ;;  %v871_v9 = vld [vmem:[#allocation5 + $0x28] sm:$0xff]   ;;  %s680_s26 = sshll.u32 %s1023_s2, 4  ;;  %s681_s26 = int_to_ptr.vmem [resolvable:$true] %s680_s26 }
  0x3c   :  { %771 = vmatpush3.bf16.msra.mxu0 %v866_v1  ;;  %v68_v7 = vpack.c.bf16 %v58_v6, %v57_v5  ;;  %783 = vmatpush3.bf16.msra.mxu1 %v870_v8  ;;  %v872_v10 = vld [vmem:[#allocation5 + $0x30] sm:$0xff]   ;;  %v873_v11 = vld [vmem:[#allocation5 + $0x38] sm:$0xff]   ;;  %v693_v12 = vld [vmem:[#allocation7] ss:$0 sm:$0xff]  ;;  %s984_s27 = scalar_lea.vmem %s681_s26, 256  ;;  %p989_p11 = scmp.lt.s32.totalorder %s681_s26, %s681_s26 }
  0x3d   :  { %772 = vmatprep.subr.bf16.mxu0 %v1021_v0  ;;  %784 = vmatprep.subr.bf16.mxu1 %v1021_v0  ;;  %v874_v22 = vld [vmem:[#allocation5 + $0x40] sm:$0xff]   ;;  %v875_v23 = vld [vmem:[#allocation5 + $0x48] sm:$0xff]   ;;  %v876_v24 = vld [vmem:[#allocation5 + $0x50] sm:$0xff]   ;;  %p985_p10 = scmp.ne.s32.totalorder %s681_s26, %s984_s27  ;;  %p990_p12 = scmp.lt.s32.totalorder %s984_s27, %s984_s27 }
  0x3e   :  { %v877_v25 = vld [vmem:[#allocation5 + $0x58] sm:$0xff]   ;;  %v699_v26 = vld [vmem:[#allocation7 + $0x1] ss:$0 sm:$0xff]  ;;  %v879_v37 = vld [vmem:[#allocation5 + $0x68] sm:$0xff]  }
  0x3f   :  { %v878_v36 = vld [vmem:[#allocation5 + $0x60] sm:$0xff]   ;;  %v880_v38 = vld [vmem:[#allocation5 + $0x70] sm:$0xff]   ;;  %v881_v39 = vld [vmem:[#allocation5 + $0x78] sm:$0xff]   ;;  %p991_p13 = por %p990_p12, %p989_p11 }
  0x40   :  { %773 = vmatpush3.bf16.msra.mxu0 %v867_v2  ;;  %785 = vmatpush3.bf16.msra.mxu1 %v871_v9  ;;  %v705_v40 = vld [vmem:[#allocation7 + $0x2] ss:$0 sm:$0xff]  ;;  %v883_v51 = vld [vmem:[#allocation5 + $0x88] sm:$0xff]   ;;  %v884_v52 = vld [vmem:[#allocation5 + $0x90] sm:$0xff]  }
  0x41   :  { %774 = vmatprep.subr.bf16.mxu0 %v1021_v0  ;;  %786 = vmatprep.subr.bf16.mxu1 %v1021_v0  ;;  %v882_v50 = vld [vmem:[#allocation5 + $0x80] sm:$0xff]   ;;  %v885_v53 = vld [vmem:[#allocation5 + $0x98] sm:$0xff]   ;;  %v887_v2 = vld [vmem:[#allocation5 + $0xa8] sm:$0xff]   ;;  %p992_p0 = pnand %p991_p13, %p985_p10 }
  0x42   :  { %v711_v54 = vld [vmem:[#allocation7 + $0x3] ss:$0 sm:$0xff]  ;;  %v717_v5 = vld [vmem:[#allocation7 + $0x4] ss:$0 sm:$0xff] }
  0x43   :  { %v886_v1 = vld [vmem:[#allocation5 + $0xa0] sm:$0xff]  }
  0x44   :  { %775 = vmatpush3.bf16.msra.mxu0 %v868_v3  ;;  %787 = vmatpush3.bf16.msra.mxu1 %v872_v10  ;;  %v888_v3 = vld [vmem:[#allocation5 + $0xb0] sm:$0xff]  }
  0x45   :  { %776 = vmatprep.subr.bf16.mxu0 %v1021_v0  ;;  %788 = vmatprep.subr.bf16.mxu1 %v1021_v0 }
  0x48   :  { %777 = vmatpush3.bf16.msra.mxu0 %v869_v4  ;;  %789 = vmatpush3.bf16.msra.mxu1 %v873_v11  ;;  %v889_v4 = vld [vmem:[#allocation5 + $0xb8] sm:$0xff]  }
  0x49   :  { %794 = vmatprep.subr.bf16.mxu0 %v1021_v0  ;;  %806 = vmatprep.subr.bf16.mxu1 %v1021_v0 }
  0x4b   :  { %779 = vmatmul.mubr.msk.bf16.vlgmr.msra.gmra.mrb[0].mxu0 %vm99_vm1, %v68_v7 }
  0x4c   :  { %802 = vmatprep.mubr.msk.bf16.mxu0 %vm1022_vm0, %v1021_v0  ;;  %795 = vmatpush3.bf16.msra.mxu0 %v874_v22 }
  0x4d   :  { %796 = vmatprep.subr.bf16.mxu0 %v1021_v0 }
  0x50   :  { %797 = vmatpush3.bf16.msra.mxu0 %v875_v23 }
  0x51   :  { %798 = vmatprep.subr.bf16.mxu0 %v1021_v0 }
  0x54   :  { %799 = vmatpush3.bf16.msra.mxu0 %v876_v24 }
  0x55   :  { %800 = vmatprep.subr.bf16.mxu0 %v1021_v0 }
  0x58   :  { %801 = vmatpush3.bf16.msra.mxu0 %v877_v25 }
  0x59   :  { %818 = vmatprep.subr.bf16.mxu0 %v1021_v0 }
 0x11e   :  { %v137_v13 = vpop.f32.mrb[0].mxu0 }
 0x11f   :  { %v138_v14 = vadd.f32 %v693_v12, %v137_v13  ;;  %v780_v15 = vpop.f32.mrb[1].mxu0 }
 0x120   :  { %v140_v16 = vpop.f32.mrb[2].mxu0  ;;  %v890_v15 = vld [vmem:[#allocation5 + $0xc0] sm:$0xff]  }
 0x121   :  { %v141_v17 = vadd.f32 %v693_v12, %v140_v16  ;;  %v781_v18 = vpop.f32.mrb[3].mxu0  ;;  %894 = vtanh.f32 %v138_v14  ;;  %v891_v16 = vld [vmem:[#allocation5 + $0xc8] sm:$0xff]  }
 0x122   :  { %v893_v18 = vld [vmem:[#allocation5 + $0xd8] sm:$0xff]  }
 0x123   :  { %896 = vtanh.f32 %v141_v17  ;;  %v892_v17 = vld [vmem:[#allocation5 + $0xd0] sm:$0xff]  }
 0x12b   :  { %v895_v19 = vpop.eup %894 }
 0x12d   :  { %v897_v20 = vpop.eup %896 }
 0x12e   :  { %v157_v21 = vpack.c.bf16 %v897_v20, %v895_v19  ;;  %v723_v19 = vld [vmem:[#allocation7 + $0x5] ss:$0 sm:$0xff] }
 0x130   :  { %791 = vmatmul.mubr.msk.bf16.vlgmr.msra.gmra.mrb[0].mxu1 %vm99_vm1, %v157_v21 }
 0x131   :  { %814 = vmatprep.mubr.msk.bf16.mxu1 %vm1022_vm0, %v1021_v0  ;;  %807 = vmatpush3.bf16.msra.mxu1 %v878_v36 }
 0x132   :  { %808 = vmatprep.subr.bf16.mxu1 %v1021_v0 }
 0x135   :  { %809 = vmatpush3.bf16.msra.mxu1 %v879_v37 }
 0x136   :  { %810 = vmatprep.subr.bf16.mxu1 %v1021_v0 }
 0x139   :  { %811 = vmatpush3.bf16.msra.mxu1 %v880_v38 }
 0x13a   :  { %812 = vmatprep.subr.bf16.mxu1 %v1021_v0 }
 0x13d   :  { %813 = vmatpush3.bf16.msra.mxu1 %v881_v39 }
 0x13e   :  { %830 = vmatprep.subr.bf16.mxu1 %v1021_v0 }
 0x203   :  { %v225_v27 = vpop.f32.mrb[0].mxu1 }
 0x204   :  { %v226_v28 = vadd.f32 %v699_v26, %v225_v27  ;;  %v792_v29 = vpop.f32.mrb[1].mxu1 }
 0x205   :  { %v228_v30 = vpop.f32.mrb[2].mxu1  ;;  %v729_v29 = vld [vmem:[#allocation7 + $0x6] ss:$0 sm:$0xff] }
 0x206   :  { %v229_v31 = vadd.f32 %v699_v26, %v228_v30  ;;  %v793_v32 = vpop.f32.mrb[3].mxu1  ;;  %898 = vtanh.f32 %v226_v28 }
 0x208   :  { %900 = vtanh.f32 %v229_v31 }
 0x210   :  { %v899_v33 = vpop.eup %898 }
 0x212   :  { %v901_v34 = vpop.eup %900 }
 0x213   :  { %v245_v35 = vpack.c.bf16 %v901_v34, %v899_v33 }
 0x215   :  { %803 = vmatmul.mubr.msk.bf16.vlgmr.msra.gmra.mrb[4].mxu0 %vm99_vm1, %v245_v35 }
 0x216   :  { %826 = vmatprep.mubr.msk.bf16.mxu0 %vm1022_vm0, %v1021_v0  ;;  %819 = vmatpush3.bf16.msra.mxu0 %v882_v50 }
 0x217   :  { %820 = vmatprep.subr.bf16.mxu0 %v1021_v0 }
 0x21a   :  { %821 = vmatpush3.bf16.msra.mxu0 %v883_v51 }
 0x21b   :  { %822 = vmatprep.subr.bf16.mxu0 %v1021_v0 }
 0x21e   :  { %823 = vmatpush3.bf16.msra.mxu0 %v884_v52 }
 0x21f   :  { %824 = vmatprep.subr.bf16.mxu0 %v1021_v0 }
 0x222   :  { %825 = vmatpush3.bf16.msra.mxu0 %v885_v53 }
 0x223   :  { %842 = vmatprep.subr.bf16.mxu0 %v1021_v0 }
 0x2e8   :  { %v313_v41 = vpop.f32.mrb[4].mxu0 }
 0x2e9   :  { %v314_v42 = vadd.f32 %v705_v40, %v313_v41  ;;  %v804_v43 = vpop.f32.mrb[5].mxu0 }
 0x2ea   :  { %v316_v44 = vpop.f32.mrb[6].mxu0 }
 0x2eb   :  { %v317_v45 = vadd.f32 %v705_v40, %v316_v44  ;;  %v805_v46 = vpop.f32.mrb[7].mxu0  ;;  %902 = vtanh.f32 %v314_v42 }
 0x2ed   :  { %904 = vtanh.f32 %v317_v45 }
 0x2f5   :  { %v903_v47 = vpop.eup %902 }
 0x2f7   :  { %v905_v48 = vpop.eup %904 }
 0x2f8   :  { %v333_v49 = vpack.c.bf16 %v905_v48, %v903_v47 }
 0x2fa   :  { %815 = vmatmul.mubr.msk.bf16.vlgmr.msra.gmra.mrb[4].mxu1 %vm99_vm1, %v333_v49 }
 0x2fb   :  { %838 = vmatprep.mubr.msk.bf16.mxu1 %vm1022_vm0, %v1021_v0  ;;  %831 = vmatpush3.bf16.msra.mxu1 %v886_v1 }
 0x2fc   :  { %832 = vmatprep.subr.bf16.mxu1 %v1021_v0 }
 0x2ff   :  { %833 = vmatpush3.bf16.msra.mxu1 %v887_v2 }
 0x300   :  { %834 = vmatprep.subr.bf16.mxu1 %v1021_v0 }
 0x303   :  { %835 = vmatpush3.bf16.msra.mxu1 %v888_v3 }
 0x304   :  { %836 = vmatprep.subr.bf16.mxu1 %v1021_v0 }
 0x307   :  { %837 = vmatpush3.bf16.msra.mxu1 %v889_v4 }
 0x3cd   :  { %v401_v55 = vpop.f32.mrb[4].mxu1 }
 0x3ce   :  { %v402_v56 = vadd.f32 %v711_v54, %v401_v55  ;;  %v816_v57 = vpop.f32.mrb[5].mxu1 }
 0x3cf   :  { %v404_v58 = vpop.f32.mrb[6].mxu1 }
 0x3d0   :  { %v405_v59 = vadd.f32 %v711_v54, %v404_v58  ;;  %v817_v60 = vpop.f32.mrb[7].mxu1  ;;  %906 = vtanh.f32 %v402_v56 }
 0x3d2   :  { %908 = vtanh.f32 %v405_v59 }
 0x3da   :  { %v907_v61 = vpop.eup %906 }
 0x3dc   :  { %v909_v62 = vpop.eup %908 }
 0x3dd   :  { %v421_v63 = vpack.c.bf16 %v909_v62, %v907_v61 }
 0x3df   :  { %827 = vmatmul.mubr.msk.bf16.vlgmr.msra.gmra.mrb[8].mxu0 %vm99_vm1, %v421_v63 }
 0x3e0   :  { %850 = vmatprep.mubr.msk.bf16.mxu0 %vm1022_vm0, %v1021_v0  ;;  %843 = vmatpush3.bf16.msra.mxu0 %v890_v15 }
 0x3e1   :  { %844 = vmatprep.subr.bf16.mxu0 %v1021_v0 }
 0x3e4   :  { %845 = vmatpush3.bf16.msra.mxu0 %v891_v16 }
 0x3e5   :  { %846 = vmatprep.subr.bf16.mxu0 %v1021_v0 }
 0x3e8   :  { %847 = vmatpush3.bf16.msra.mxu0 %v892_v17 }
 0x3e9   :  { %848 = vmatprep.subr.bf16.mxu0 %v1021_v0 }
 0x3ec   :  { %849 = vmatpush3.bf16.msra.mxu0 %v893_v18 }
 0x4b2   :  { %v489_v6 = vpop.f32.mrb[8].mxu0 }
 0x4b3   :  { %v490_v7 = vadd.f32 %v717_v5, %v489_v6  ;;  %v828_v8 = vpop.f32.mrb[9].mxu0 }
 0x4b4   :  { %v492_v9 = vpop.f32.mrb[10].mxu0 }
 0x4b5   :  { %v493_v10 = vadd.f32 %v717_v5, %v492_v9  ;;  %v829_v11 = vpop.f32.mrb[11].mxu0  ;;  %910 = vtanh.f32 %v490_v7 }
 0x4b7   :  { %912 = vtanh.f32 %v493_v10 }
 0x4bf   :  { %v911_v12 = vpop.eup %910 }
 0x4c1   :  { %v913_v13 = vpop.eup %912 }
 0x4c2   :  { %v509_v14 = vpack.c.bf16 %v913_v13, %v911_v12 }
 0x4c4   :  { %839 = vmatmul.mubr.msk.bf16.vlgmr.msra.gmra.mrb[8].mxu1 %vm99_vm1, %v509_v14 }
 0x597   :  { %v577_v20 = vpop.f32.mrb[8].mxu1 }
 0x598   :  { %v578_v21 = vadd.f32 %v723_v19, %v577_v20  ;;  %v840_v22 = vpop.f32.mrb[9].mxu1 }
 0x599   :  { %v580_v23 = vpop.f32.mrb[10].mxu1 }
 0x59a   :  { %v581_v24 = vadd.f32 %v723_v19, %v580_v23  ;;  %v841_v25 = vpop.f32.mrb[11].mxu1  ;;  %914 = vtanh.f32 %v578_v21 }
 0x59c   :  { %916 = vtanh.f32 %v581_v24 }
 0x5a4   :  { %v915_v26 = vpop.eup %914 }
 0x5a6   :  { %v917_v27 = vpop.eup %916 }
 0x5a7   :  { %v597_v28 = vpack.c.bf16 %v917_v27, %v915_v26 }
 0x5a9   :  { %851 = vmatmul.mubr.msk.bf16.vlgmr.msra.gmra.mrb[12].mxu0 %vm99_vm1, %v597_v28 }
 0x67c   :  { %v665_v30 = vpop.f32.mrb[12].mxu0 }
 0x67d   :  { %v666_v0 = vadd.f32 %v729_v29, %v665_v30  ;;  %v852_v31 = vpop.f32.mrb[13].mxu0 }
 0x67e   :  { %v668_v32 = vpop.f32.mrb[14].mxu0 }
 0x67f   :  { %v669_v33 = vadd.f32 %v729_v29, %v668_v32  ;;  %v853_v34 = vpop.f32.mrb[15].mxu0  ;;  %673 = vst.msk [vmem:[#allocation8] sm:$0xff] %vm672_vm2, %v666_v0 }
 0x681   :  { %674 = vst.msk [vmem:[#allocation8 + $0x8] sm:$0xff] %vm672_vm2, %v669_v33 }
 0x682   :  { %995 = shalt.err (!%p992_p0)
}
 0x683   :  { %s996_s30 = scalar_lea.hbm %s1150_s3, 256 }
 0x684   :  { %p997_p1 = scmp.ne.s32.totalorder %s1150_s3, %s996_s30  ;;  %p1000_p2 = scmp.lt.u32.totalorder %s996_s30, %s1150_s3 }
 0x686   :  { %p1002_p3 = pnand %p1000_p2, %p997_p1 }
 0x688   :  { %1005 = shalt.err (!%p1002_p3)
}
 0x689   :  { %686 = dma.vmem_to_hbm [thread:$0]  %s681_s26, 256, %s1150_s3, [#allocation4], %s1016_s1, %s1016_s1, %s1017_s9  }
 0x68a   :  { %1010 = dma.done.wait [#allocation4], 256  }
 0x68b   :  { %1011 = vsyncadd [#allocation4], 4294967040 }
 0x68c   :  { %690 = vsyncpa [#allocation3], 1 }
 0x68d   :  { %691 = vsyncpa [#allocation6], 1 }
 0x68e   :  { %692 = vsyncpa [#allocation4], 1 }

</bundles_post_ra>
